<compile_context>
chip_gen: v5e
topology: v5e:2x2
jax: 0.10.0
libtpu: 0.0.40
codegen_flags: <defaults>
</compile_context>

<pallas_src>
import functools

import jax
import jax.numpy as jnp
from jax.experimental import pallas as pl
from jax.experimental.pallas import tpu as pltpu

H1_PAD = 512    # 400 -> 512 (4 x 128 lanes; 4 MXU passes on v5e, 2 on v6e/v7x)
H2_PAD = 384    # 300 -> 384 (3 x 128 lanes; do NOT round to 512 -- +33% on v5e)


def _round_up(n, m):
    return ((n + m - 1) // m) * m


def _has_bf16_vpu():
    """v6e/v7x have a native bf16 VALU/EUP; v5e and earlier do not."""
    try:
        kind = jax.devices()[0].device_kind.lower()
    except Exception:
        return False
    return not any(tag in kind for tag in ("v2", "v3", "v4", "v5"))


def _actor_kernel(x_ref, w1_ref, b1_ref, w2_ref, b2_ref, w3_ref, b3_ref,
                  o_ref, *, max_action, negative_slope, action_dim, act_dtype):
    """Fused 3-layer MLP tile: (x@W1+b1)->lrelu->(.@W2+b2)->lrelu->(.@W3+b3)->tanh*a."""
    # bf16 operands feed the MXU; accumulation stays f32 (preferred_element_type).
    x = x_ref[...].astype(jnp.bfloat16)

    h1 = jnp.dot(x, w1_ref[...], preferred_element_type=jnp.float32) + b1_ref[...]
    h1 = h1.astype(act_dtype)                                  # bf16 on v6e/v7x, f32 on v5e
    h1 = jnp.where(h1 > 0, h1, negative_slope * h1).astype(jnp.bfloat16)

    h2 = jnp.dot(h1, w2_ref[...], preferred_element_type=jnp.float32) + b2_ref[...]
    h2 = h2.astype(act_dtype)
    h2 = jnp.where(h2 > 0, h2, negative_slope * h2).astype(jnp.bfloat16)

    h3 = jnp.dot(h2, w3_ref[...], preferred_element_type=jnp.float32) + b3_ref[...]
    # Only the first `action_dim` lanes are real; tanh + store the slim block
    # (no 128-lane f32 writeback, no post-kernel lane slice).
    h3 = h3[:, :action_dim]
    o_ref[...] = (jnp.tanh(h3) * max_action).astype(o_ref.dtype)


def prepare_actor_params(params):
    """One-time (outside the hot loop) cast + zero-pad of the raw f32 params."""
    w1, b1 = params["w1"], params["b1"]
    w2, b2 = params["w2"], params["b2"]
    w3, b3 = params["w3"], params["b3"]
    state_dim = w1.shape[0]
    action_dim = w3.shape[1]
    out_pad = _round_up(action_dim, 128)     # robust for any action_dim

    def pad2(a, rows, cols):
        return jnp.pad(a, ((0, rows - a.shape[0]), (0, cols - a.shape[1])))

    return {
        "w1": pad2(w1, state_dim, H1_PAD).astype(jnp.bfloat16),
        "b1": pad2(b1, 1, H1_PAD).astype(jnp.float32),
        "w2": pad2(w2, H1_PAD, H2_PAD).astype(jnp.bfloat16),   # extra rows are zero
        "b2": pad2(b2, 1, H2_PAD).astype(jnp.float32),
        "w3": pad2(w3, H2_PAD, out_pad).astype(jnp.bfloat16),
        "b3": pad2(b3, 1, out_pad).astype(jnp.float32),
        "action_dim": action_dim,
        "state_dim": state_dim,
        "out_pad": out_pad,
    }


def _pick_batch_tile(B, batch_tile):
    """Row-tile size: <= batch_tile, multiple of 8, minimal padding,
    and (for B > 8) an even tile count so v7x's two TensorCores share work."""
    if _round_up(B, 8) <= 8:
        return 8
    n_tiles = max(2, pl.cdiv(B, batch_tile))
    n_tiles = 2 * pl.cdiv(n_tiles, 2)            # even count for megacore
    return _round_up(pl.cdiv(B, n_tiles), 8)


def actor_forward(x, prepared, max_action, *, batch_tile=1024):
    """x: [B, state_dim] f32.  prepared: output of prepare_actor_params.
    Returns [B, action_dim] f32."""
    B, state_dim = x.shape
    assert state_dim == prepared["state_dim"]
    action_dim = prepared["action_dim"]
    out_pad = prepared["out_pad"]

    # Cap at 2048 rows: activation temporaries grow ~5-6 KB/row and v7x has
    # only 64 MiB physical VMEM.
    batch_tile = min(int(batch_tile), 2048)
    tb = _pick_batch_tile(B, batch_tile)
    b_pad = _round_up(B, tb)
    if b_pad != B:
        x = jnp.pad(x, ((0, b_pad - B), (0, 0)))

    act_dtype = jnp.bfloat16 if _has_bf16_vpu() else jnp.float32

    kernel = functools.partial(
        _actor_kernel, max_action=float(max_action), negative_slope=0.01,
        action_dim=action_dim, act_dtype=act_dtype)

    grid = (b_pad // tb,)
    resident = lambda shape: pl.BlockSpec(shape, lambda i: (0, 0))  # VMEM-resident weights

    # Above 1024 rows the intermediates exceed v5e's 16 MiB scoped default;
    # request more (still well inside v7x's 64 MiB physical VMEM).
    vmem_limit = (60 * 1024 * 1024) if tb > 1024 else None

    out = pl.pallas_call(
        kernel,
        out_shape=jax.ShapeDtypeStruct((b_pad, action_dim), jnp.float32),
        grid=grid,
        in_specs=[
            pl.BlockSpec((tb, state_dim), lambda i: (i, 0)),     # x tile (pipelined)
            resident((state_dim, H1_PAD)),                       # w1
            resident((1, H1_PAD)),                               # b1
            resident((H1_PAD, H2_PAD)),                          # w2
            resident((1, H2_PAD)),                               # b2
            resident((H2_PAD, out_pad)),                         # w3
            resident((1, out_pad)),                              # b3
        ],
        out_specs=pl.BlockSpec((tb, action_dim), lambda i: (i, 0)),  # slim output
        compiler_params=pltpu.CompilerParams(
            dimension_semantics=("parallel",),                   # v7x: 2 TCs share tiles
            vmem_limit_bytes=vmem_limit),
    )(x, prepared["w1"], prepared["b1"], prepared["w2"], prepared["b2"],
      prepared["w3"], prepared["b3"])

    return out if b_pad == B else out[:B]


# ----------------------------- init / reference -----------------------------

def _xavier_normal(key, fan_in, fan_out):
    # torch.nn.init.xavier_normal_ : std = sqrt(2 / (fan_in + fan_out))
    std = (2.0 / (fan_in + fan_out)) ** 0.5
    return std * jax.random.normal(key, (fan_in, fan_out), dtype=jnp.float32)


def init_actor_params(key, state_dim, action_dim):
    k1, k2, k3, kb1, kb2, kb3 = jax.random.split(key, 6)

    def bias(k, fan_in, n):
        bound = 1.0 / (fan_in ** 0.5)
        return jax.random.uniform(k, (1, n), jnp.float32, -bound, bound)

    return {
        "w1": _xavier_normal(k1, state_dim, 400),
        "b1": bias(kb1, state_dim, 400),
        "w2": _xavier_normal(k2, 400, 300),
        "b2": bias(kb2, 400, 300),
        "w3": _xavier_normal(k3, 300, action_dim),
        "b3": bias(kb3, 300, action_dim),
    }


def actor_reference(x, params, max_action):
    """Pure-JAX f32 reference for correctness checking."""
    def lrelu(v):
        return jnp.where(v > 0, v, 0.01 * v)
    h = lrelu(x @ params["w1"] + params["b1"])
    h = lrelu(h @ params["w2"] + params["b2"])
    return jnp.tanh(h @ params["w3"] + params["b3"]) * max_action


if __name__ == "__main__":
    key = jax.random.PRNGKey(0)
    k_param, k_x1, k_x2 = jax.random.split(key, 3)

    state_dim = 16
    action_dim = 4
    max_action = 2.0

    params = init_actor_params(k_param, state_dim, action_dim)
    prepared = prepare_actor_params(params)           # one-time cast + pad

    # Small batch (single tile).
    x_small = jax.random.normal(k_x1, (2, state_dim), dtype=jnp.float32)
    out_small = jax.block_until_ready(actor_forward(x_small, prepared, max_action))
    ref_small = actor_reference(x_small, params, max_action)
    assert out_small.shape == (2, action_dim)
    assert jnp.allclose(out_small, ref_small, atol=4e-2, rtol=4e-2), "small-batch mismatch"
    assert bool(jnp.all(jnp.abs(out_small) <= max_action + 1e-6))

    # Multi-tile batch (exercises the 2-tile grid, row padding, slim output).
    x_big = jax.random.normal(k_x2, (300, state_dim), dtype=jnp.float32)
    out_big = jax.block_until_ready(actor_forward(x_big, prepared, max_action))
    ref_big = actor_reference(x_big, params, max_action)
    assert out_big.shape == (300, action_dim)
    assert jnp.allclose(out_big, ref_big, atol=4e-2, rtol=4e-2), "multi-tile mismatch"
    assert bool(jnp.all(jnp.abs(out_big) <= max_action + 1e-6))

    print("KERNEL_OK")
</pallas_src>

<mosaic_0001>
module attributes {stable_mosaic.version = 11 : i64} {
  func.func @_actor_kernel(%arg0: i32, %arg1: memref<8x16xf32, #tpu.memory_space<vmem>>, %arg2: memref<16x512xbf16, #tpu.memory_space<vmem>>, %arg3: memref<1x512xf32, #tpu.memory_space<vmem>>, %arg4: memref<512x384xbf16, #tpu.memory_space<vmem>>, %arg5: memref<1x384xf32, #tpu.memory_space<vmem>>, %arg6: memref<384x128xbf16, #tpu.memory_space<vmem>>, %arg7: memref<1x128xf32, #tpu.memory_space<vmem>>, %arg8: memref<8x4xf32, #tpu.memory_space<vmem>>) attributes {dimension_semantics = [#tpu.dimension_semantics<parallel>], iteration_bounds = array<i64: 1>, scalar_prefetch = 0 : i64, scratch_operands = 0 : i64, tpu.core_type = #tpu.core_type<tc>, window_params = [{transform_indices = @transform_0, window_bounds = array<i64: 8, 16>}, {pipeline_mode = #tpu.pipeline_mode<synchronous>, transform_indices = @transform_1, window_bounds = array<i64: 16, 512>}, {pipeline_mode = #tpu.pipeline_mode<synchronous>, transform_indices = @transform_2, window_bounds = array<i64: 1, 512>}, {pipeline_mode = #tpu.pipeline_mode<synchronous>, transform_indices = @transform_3, window_bounds = array<i64: 512, 384>}, {pipeline_mode = #tpu.pipeline_mode<synchronous>, transform_indices = @transform_4, window_bounds = array<i64: 1, 384>}, {pipeline_mode = #tpu.pipeline_mode<synchronous>, transform_indices = @transform_5, window_bounds = array<i64: 384, 128>}, {pipeline_mode = #tpu.pipeline_mode<synchronous>, transform_indices = @transform_6, window_bounds = array<i64: 1, 128>}, {transform_indices = @transform_7, window_bounds = array<i64: 8, 4>}]} {
    %c0 = arith.constant 0 : index
    %c0_0 = arith.constant 0 : index
    %0 = vector.load %arg1[%c0, %c0_0] : memref<8x16xf32, #tpu.memory_space<vmem>>, vector<8x16xf32>
    %1 = arith.truncf %0 : vector<8x16xf32> to vector<8x16xbf16>
    %c0_1 = arith.constant 0 : index
    %c0_2 = arith.constant 0 : index
    %2 = vector.load %arg2[%c0_1, %c0_2] : memref<16x512xbf16, #tpu.memory_space<vmem>>, vector<16x512xbf16>
    %cst = arith.constant dense<0.000000e+00> : vector<8x512xf32>
    %3 = tpu.matmul %1, %2, %cst {dimension_numbers = #tpu.dot_dimension_numbers<[1], [0], [0], [1], [0, 0, 1, 1], [], []>} : vector<8x16xbf16>, vector<16x512xbf16>, vector<8x512xf32> -> vector<8x512xf32>
    %c0_3 = arith.constant 0 : index
    %c0_4 = arith.constant 0 : index
    %4 = vector.load %arg3[%c0_3, %c0_4] : memref<1x512xf32, #tpu.memory_space<vmem>>, vector<1x512xf32>
    %5 = vector.broadcast %4 : vector<1x512xf32> to vector<8x512xf32>
    %6 = arith.addf %3, %5 : vector<8x512xf32>
    %7 = arith.truncf %6 : vector<8x512xf32> to vector<8x512xbf16>
    %cst_5 = arith.constant 0.000000e+00 : bf16
    %8 = vector.broadcast %cst_5 : bf16 to vector<8x512xbf16>
    %9 = arith.cmpf ogt, %7, %8 : vector<8x512xbf16>
    %cst_6 = arith.constant 1.000980e-02 : bf16
    %10 = vector.broadcast %cst_6 : bf16 to vector<8x512xbf16>
    %11 = arith.mulf %10, %7 : vector<8x512xbf16>
    %12 = arith.select %9, %7, %11 : vector<8x512xi1>, vector<8x512xbf16>
    %c0_7 = arith.constant 0 : index
    %c0_8 = arith.constant 0 : index
    %13 = vector.load %arg4[%c0_7, %c0_8] : memref<512x384xbf16, #tpu.memory_space<vmem>>, vector<512x384xbf16>
    %cst_9 = arith.constant dense<0.000000e+00> : vector<8x384xf32>
    %14 = tpu.matmul %12, %13, %cst_9 {dimension_numbers = #tpu.dot_dimension_numbers<[1], [0], [0], [1], [0, 0, 1, 1], [], []>} : vector<8x512xbf16>, vector<512x384xbf16>, vector<8x384xf32> -> vector<8x384xf32>
    %c0_10 = arith.constant 0 : index
    %c0_11 = arith.constant 0 : index
    %15 = vector.load %arg5[%c0_10, %c0_11] : memref<1x384xf32, #tpu.memory_space<vmem>>, vector<1x384xf32>
    %16 = vector.broadcast %15 : vector<1x384xf32> to vector<8x384xf32>
    %17 = arith.addf %14, %16 : vector<8x384xf32>
    %18 = arith.truncf %17 : vector<8x384xf32> to vector<8x384xbf16>
    %cst_12 = arith.constant 0.000000e+00 : bf16
    %19 = vector.broadcast %cst_12 : bf16 to vector<8x384xbf16>
    %20 = arith.cmpf ogt, %18, %19 : vector<8x384xbf16>
    %cst_13 = arith.constant 1.000980e-02 : bf16
    %21 = vector.broadcast %cst_13 : bf16 to vector<8x384xbf16>
    %22 = arith.mulf %21, %18 : vector<8x384xbf16>
    %23 = arith.select %20, %18, %22 : vector<8x384xi1>, vector<8x384xbf16>
    %c0_14 = arith.constant 0 : index
    %c0_15 = arith.constant 0 : index
    %24 = vector.load %arg6[%c0_14, %c0_15] : memref<384x128xbf16, #tpu.memory_space<vmem>>, vector<384x128xbf16>
    %cst_16 = arith.constant dense<0.000000e+00> : vector<8x128xf32>
    %25 = tpu.matmul %23, %24, %cst_16 {dimension_numbers = #tpu.dot_dimension_numbers<[1], [0], [0], [1], [0, 0, 1, 1], [], []>} : vector<8x384xbf16>, vector<384x128xbf16>, vector<8x128xf32> -> vector<8x128xf32>
    %c0_17 = arith.constant 0 : index
    %c0_18 = arith.constant 0 : index
    %26 = vector.load %arg7[%c0_17, %c0_18] : memref<1x128xf32, #tpu.memory_space<vmem>>, vector<1x128xf32>
    %27 = vector.broadcast %26 : vector<1x128xf32> to vector<8x128xf32>
    %28 = arith.addf %25, %27 : vector<8x128xf32>
    %29 = vector.extract_strided_slice %28 {offsets = [0, 0], sizes = [8, 4], strides = [1, 1]} : vector<8x128xf32> to vector<8x4xf32>
    %30 = math.tanh %29 : vector<8x4xf32>
    %cst_19 = arith.constant 2.000000e+00 : f32
    %31 = vector.broadcast %cst_19 : f32 to vector<8x4xf32>
    %32 = arith.mulf %30, %31 : vector<8x4xf32>
    %c0_20 = arith.constant 0 : index
    %c0_21 = arith.constant 0 : index
    %33 = vector.load %arg8[%c0_20, %c0_21] : memref<8x4xf32, #tpu.memory_space<vmem>>, vector<8x4xf32>
    tpu.vector_store %arg8[%c0_20, %c0_21], %32 {strides = array<i32>} : memref<8x4xf32, #tpu.memory_space<vmem>>, vector<8x4xf32>,
    return
  }
  func.func @transform_0(%arg0: i32) -> (i32, i32) {
    %c0_i32 = arith.constant 0 : i32
    %c0_i32_0 = arith.constant 0 : i32
    return %arg0, %c0_i32 : i32, i32
  }
  func.func @transform_1(%arg0: i32) -> (i32, i32) {
    %c0_i32 = arith.constant 0 : i32
    %c0_i32_0 = arith.constant 0 : i32
    %c0_i32_1 = arith.constant 0 : i32
    return %c0_i32, %c0_i32_0 : i32, i32
  }
  func.func @transform_2(%arg0: i32) -> (i32, i32) {
    %c0_i32 = arith.constant 0 : i32
    %c0_i32_0 = arith.constant 0 : i32
    %c0_i32_1 = arith.constant 0 : i32
    return %c0_i32, %c0_i32_0 : i32, i32
  }
  func.func @transform_3(%arg0: i32) -> (i32, i32) {
    %c0_i32 = arith.constant 0 : i32
    %c0_i32_0 = arith.constant 0 : i32
    %c0_i32_1 = arith.constant 0 : i32
    return %c0_i32, %c0_i32_0 : i32, i32
  }
  func.func @transform_4(%arg0: i32) -> (i32, i32) {
    %c0_i32 = arith.constant 0 : i32
    %c0_i32_0 = arith.constant 0 : i32
    %c0_i32_1 = arith.constant 0 : i32
    return %c0_i32, %c0_i32_0 : i32, i32
  }
  func.func @transform_5(%arg0: i32) -> (i32, i32) {
    %c0_i32 = arith.constant 0 : i32
    %c0_i32_0 = arith.constant 0 : i32
    %c0_i32_1 = arith.constant 0 : i32
    return %c0_i32, %c0_i32_0 : i32, i32
  }
  func.func @transform_6(%arg0: i32) -> (i32, i32) {
    %c0_i32 = arith.constant 0 : i32
    %c0_i32_0 = arith.constant 0 : i32
    %c0_i32_1 = arith.constant 0 : i32
    return %c0_i32, %c0_i32_0 : i32, i32
  }
  func.func @transform_7(%arg0: i32) -> (i32, i32) {
    %c0_i32 = arith.constant 0 : i32
    %c0_i32_0 = arith.constant 0 : i32
    return %arg0, %c0_i32 : i32, i32
  }
}

</mosaic_0001>

<bundles_post_ra>
// kernel: tpu_custom_call.1
= control target key start
LH: loop header
LB: loop body
LE: loop exit
PB: predicated region body
PF: predicated region fallthrough
CT: control target
= control target key end

     0   :  { %12 = vsyncpa [#allocation3], 0  ;;  %s2174_s0 = inlined_call_operand.hbm [shape: f32[8,16], index: 0, kind: input, shape index: {}]   ;;  %s2175_s1 = inlined_call_operand.hbm [shape: bf16[16,512], index: 1, kind: input, shape index: {}]   ;;  %s2176_s2 = inlined_call_operand.hbm [shape: f32[1,512], index: 2, kind: input, shape index: {}]   ;;  %s2177_s3 = inlined_call_operand.hbm [shape: bf16[512,384], index: 3, kind: input, shape index: {}]   ;;  %s2178_s4 = inlined_call_operand.vmem [shape: f32[1,384], index: 4, kind: input, shape index: {}]   ;;  %s2179_s5 = inlined_call_operand.hbm [shape: bf16[384,128], index: 5, kind: input, shape index: {}]   ;;  %s2180_s6 = inlined_call_operand.vmem [shape: f32[1,128], index: 6, kind: input, shape index: {}]   ;;  %s2181_s7 = inlined_call_operand.vmem [shape: f32[8,4], index: 7, kind: output, shape index: {}]  }
   0x1   :  { %13 = vsyncpa [#allocation5], 0  ;;  %s30_s26 = sshll.u32 %s2175_s1, 4  ;;  %s31_s26 = int_to_ptr.hbm [resolvable:$true] %s30_s26 }
   0x2   :  { %14 = vsyncpa [#allocation8], 0  ;;  %s2069_s27 = smov [#allocation4]   ;;  %s54_s8 = sshll.u32 %s2177_s3, 4  ;;  %s55_s8 = int_to_ptr.hbm [resolvable:$true] %s54_s8 }
   0x3   :  { %s32_s28 = sshll.u32 %s2069_s27, 4  ;;  %s2070_s9 = smov 256   ;;  %s33_s28 = int_to_ptr.vmem [resolvable:$true] %s32_s28 }
   0x4   :  { %s2071_s10 = smov 16   ;;  %s2072_s11 = smov [#allocation7]  }
   0x5   :  { %38 = dma.hbm_to_vmem [thread:$0]  %s31_s26, 512, %s33_s28, [#allocation5], %s2070_s9, %s2070_s9, %s2071_s10  }
   0x6   :  { %s56_s12 = sshll.u32 %s2072_s11, 4  ;;  %s2073_s13 = smov 192   ;;  %s57_s12 = int_to_ptr.vmem [resolvable:$true] %s56_s12 }
   0x7   :  { %s2074_s14 = smov 12   ;;  %s20_s16 = sshll.u32 %s2174_s0, 4  ;;  %s21_s16 = int_to_ptr.hbm [resolvable:$true] %s20_s16 }
   0x8   :  { %62 = dma.hbm_to_vmem [thread:$0]  %s55_s8, 12288, %s57_s12, [#allocation8], %s2073_s13, %s2073_s13, %s2074_s14  }
   0x9   :  { %s2075_s17 = smov [#allocation2]   ;;  %s44_s20 = sshll.u32 %s2176_s2, 4  ;;  %s45_s20 = int_to_ptr.hbm [resolvable:$true] %s44_s20 }
   0xa   :  { %s22_s18 = sshll.u32 %s2075_s17, 4  ;;  %s2076_s21 = smov [#allocation6]   ;;  %s23_s18 = int_to_ptr.vmem [resolvable:$true] %s22_s18 }
   0xb   :  { %25 = dma.hbm_to_vmem [thread:$0]  %s21_s16, 128, %s23_s18, [#allocation3]  }
   0xc   :  { %s46_s22 = sshll.u32 %s2076_s21, 4  ;;  %s69_s25 = sshll.u32 %s2179_s5, 4  ;;  %s47_s22 = int_to_ptr.vmem [resolvable:$true] %s46_s22  ;;  %s70_s25 = int_to_ptr.hbm [resolvable:$true] %s69_s25 }
   0xd   :  { %49 = dma.hbm_to_vmem [thread:$0]  %s45_s20, 64, %s47_s22, [#allocation5]  }
   0xe   :  { %s2077_s0 = smov [#allocation9]   ;;  %s2078_s27 = smov 64  }
   0xf   :  { %s71_s26 = sshll.u32 %s2077_s0, 4  ;;  %s2079_s28 = smov 4   ;;  %s72_s26 = int_to_ptr.vmem [resolvable:$true] %s71_s26 }
  0x10   :  { %77 = dma.hbm_to_vmem [thread:$0]  %s70_s25, 3072, %s72_s26, [#allocation8], %s2078_s27, %s2078_s27, %s2079_s28  }
  0x11   :  { %2063 = dma.done.wait [#allocation3], 128  }
  0x12   :  { %2064 = vsyncadd [#allocation3], 4294967168 }
  0x13   :  { %2065 = dma.done.wait [#allocation5], 576  }
  0x14   :  { %2066 = vsyncadd [#allocation5], 4294966720 }
  0x15   :  { %2067 = dma.done.wait [#allocation8], 15360  }
  0x16   :  { %2068 = vsyncadd [#allocation8], 4294951936  ;;  %v1307_v0 = vld [vmem:[#allocation4] sm:$0xf]  ;;  %v1807_v1 = vld [vmem:[#allocation4 + $0xc] sm:$0xf0] }
  0x17   :  { %v101_v2 = vld [vmem:[#allocation2] sm:$0xff]  ;;  %vm137_vm0 = vcmask 130048   ;;  %v1308_v3 = vor.u32 %v1807_v1, %v1307_v0  ;;  %v1806_v4 = vld [vmem:[#allocation4 + $0xc] sm:$0xf]  ;;  %v1805_v6 = vld [vmem:[#allocation4 + $0x4] sm:$0xf] }
  0x18   :  { %v1317_v5 = vld [vmem:[#allocation4 + $0x18] sm:$0xf0]  ;;  %v2135_v7 = vpack.c.bf16 %v101_v2, %v101_v2  ;;  %v1309_v9 = vld [vmem:[#allocation4 + $0x10] sm:$0xf0]  ;;  %v1315_v10 = vld [vmem:[#allocation4 + $0x8] sm:$0xf] }
  0x19   :  { %v1320_v8 = vor.u32 %v1806_v4, %v1317_v5  ;;  %v1808_v11 = vld [vmem:[#allocation4 + $0x14] sm:$0xf0]  ;;  %148 = vmatpush.bf16.msra.mxu3 %v1308_v3  ;;  %v1312_v12 = vor.u32 %v1805_v6, %v1309_v9  ;;  %v1411_v14 = vld [vmem:[#allocation7 + $0xa8] sm:$0xf]  ;;  %v1399_v19 = vld [vmem:[#allocation7 + $0x90] sm:$0xf] }
  0x1a   :  { %v1316_v13 = vor.u32 %v1808_v11, %v1315_v10  ;;  %v1831_v15 = vld [vmem:[#allocation7 + $0xb0] sm:$0xf0]  ;;  %v1507_v16 = vld [vmem:[#allocation7 + $0x168] sm:$0xf]  ;;  %v1828_v20 = vld [vmem:[#allocation7 + $0x98] sm:$0xf0] }
  0x1b   :  { %v1412_v17 = vor.u32 %v1831_v15, %v1411_v14  ;;  %v1855_v18 = vld [vmem:[#allocation7 + $0x170] sm:$0xf0]  ;;  %161 = vmatpush.bf16.msra.mxu1 %v1312_v12  ;;  %v1495_v22 = vld [vmem:[#allocation7 + $0x150] sm:$0xf]  ;;  %v1852_v23 = vld [vmem:[#allocation7 + $0x158] sm:$0xf0]  ;;  %v1400_v24 = vor.u32 %v1828_v20, %v1399_v19 }
  0x1c   :  { %174 = vmatpush.bf16.msra.mxu2 %v1316_v13  ;;  %v1508_v21 = vor.u32 %v1855_v18, %v1507_v16  ;;  %1321 = vmatmul.msk.bf16.vlgmr.msra.gmra.mxu3 %vm137_vm0, %v2135_v7  ;;  %v1496_v25 = vor.u32 %v1852_v23, %v1495_v22  ;;  %v1387_v26 = vld [vmem:[#allocation7 + $0x78] sm:$0xf]  ;;  %v1825_v27 = vld [vmem:[#allocation7 + $0x80] sm:$0xf0]  ;;  %v1603_v30 = vld [vmem:[#allocation7 + $0x228] sm:$0xf] }
  0x1d   :  { %187 = vmatpush.bf16.msrb.mxu3 %v1320_v8  ;;  %875 = vmatpush.bf16.msra.mxu0 %v1412_v17  ;;  %v1483_v28 = vld [vmem:[#allocation7 + $0x138] sm:$0xf]  ;;  %v1849_v29 = vld [vmem:[#allocation7 + $0x140] sm:$0xf0]  ;;  %v1388_v31 = vor.u32 %v1825_v27, %v1387_v26  ;;  %v1879_v32 = vld [vmem:[#allocation7 + $0x230] sm:$0xf0] }
  0x1e   :  { %1322 = vmatmul.msk.bf16.vlgmr.msra.gmra.mxu1 %vm137_vm0, %v2135_v7  ;;  %v1699_v33 = vld [vmem:[#allocation7 + $0x2e8] sm:$0xf]  ;;  %v1903_v34 = vld [vmem:[#allocation7 + $0x2f0] sm:$0xf0]  ;;  %v1484_v35 = vor.u32 %v1849_v29, %v1483_v28  ;;  %v1375_v36 = vld [vmem:[#allocation7 + $0x60] sm:$0xf]  ;;  %v1604_v39 = vor.u32 %v1879_v32, %v1603_v30 }
  0x1f   :  { %888 = vmatpush.bf16.msrb.mxu1 %v1508_v21  ;;  %1323 = vmatmul.msk.bf16.vlgmr.msra.gmra.mxu2 %vm137_vm0, %v2135_v7  ;;  %v1822_v37 = vld [vmem:[#allocation7 + $0x68] sm:$0xf0]  ;;  %v1471_v38 = vld [vmem:[#allocation7 + $0x120] sm:$0xf]  ;;  %v1700_v40 = vor.u32 %v1903_v34, %v1699_v33  ;;  %v1591_v42 = vld [vmem:[#allocation7 + $0x210] sm:$0xf] }
  0x20   :  { %v1846_v41 = vld [vmem:[#allocation7 + $0x128] sm:$0xf0]  ;;  %v1876_v43 = vld [vmem:[#allocation7 + $0x218] sm:$0xf0]  ;;  %901 = vmatpush.bf16.msrb.mxu2 %v1604_v39  ;;  %v1687_v45 = vld [vmem:[#allocation7 + $0x2d0] sm:$0xf]  ;;  %v1376_v47 = vor.u32 %v1822_v37, %v1375_v36 }
  0x21   :  { %876 = vmatpush.bf16.msra.mxu0 %v1400_v24  ;;  %914 = vmatpush.bf16.msra.mxu3 %v1700_v40  ;;  %v1592_v44 = vor.u32 %v1876_v43, %v1591_v42  ;;  %v1900_v46 = vld [vmem:[#allocation7 + $0x2d8] sm:$0xf0]  ;;  %v1363_v48 = vld [vmem:[#allocation7 + $0x48] sm:$0xf]  ;;  %v1819_v49 = vld [vmem:[#allocation7 + $0x50] sm:$0xf0]  ;;  %v1472_v51 = vor.u32 %v1846_v41, %v1471_v38 }
  0x22   :  { %v1688_v50 = vor.u32 %v1900_v46, %v1687_v45  ;;  %v1579_v52 = vld [vmem:[#allocation7 + $0x1f8] sm:$0xf]  ;;  %v1873_v53 = vld [vmem:[#allocation7 + $0x200] sm:$0xf0]  ;;  %v1459_v55 = vld [vmem:[#allocation7 + $0x108] sm:$0xf]  ;;  %v1364_v61 = vor.u32 %v1819_v49, %v1363_v48 }
  0x23   :  { %889 = vmatpush.bf16.msrb.mxu1 %v1496_v25  ;;  %v1675_v54 = vld [vmem:[#allocation7 + $0x2b8] sm:$0xf]  ;;  %v1843_v56 = vld [vmem:[#allocation7 + $0x110] sm:$0xf0]  ;;  %v1897_v57 = vld [vmem:[#allocation7 + $0x2c0] sm:$0xf0]  ;;  %v1580_v58 = vor.u32 %v1873_v53, %v1579_v52 }
  0x24   :  { %902 = vmatpush.bf16.msrb.mxu2 %v1592_v44  ;;  %v1676_v59 = vor.u32 %v1897_v57, %v1675_v54  ;;  %v1567_v60 = vld [vmem:[#allocation7 + $0x1e0] sm:$0xf]  ;;  %v1870_v62 = vld [vmem:[#allocation7 + $0x1e8] sm:$0xf0]  ;;  %v1460_v1 = vor.u32 %v1843_v56, %v1459_v55  ;;  %v1351_v2 = vld [vmem:[#allocation7 + $0x30] sm:$0xf] }
  0x25   :  { %877 = vmatpush.bf16.msra.mxu0 %v1388_v31  ;;  %915 = vmatpush.bf16.msra.mxu3 %v1688_v50  ;;  %v1663_v63 = vld [vmem:[#allocation7 + $0x2a0] sm:$0xf]  ;;  %v1894_v0 = vld [vmem:[#allocation7 + $0x2a8] sm:$0xf0]  ;;  %v1816_v3 = vld [vmem:[#allocation7 + $0x38] sm:$0xf0]  ;;  %v1568_v6 = vor.u32 %v1870_v62, %v1567_v60 }
  0x26   :  { %v1447_v4 = vld [vmem:[#allocation7 + $0xf0] sm:$0xf]  ;;  %v1840_v5 = vld [vmem:[#allocation7 + $0xf8] sm:$0xf0]  ;;  %v1664_v8 = vor.u32 %v1894_v0, %v1663_v63  ;;  %v1555_v9 = vld [vmem:[#allocation7 + $0x1c8] sm:$0xf]  ;;  %v1352_v10 = vor.u32 %v1816_v3, %v1351_v2 }
  0x27   :  { %890 = vmatpush.bf16.msrb.mxu1 %v1484_v35  ;;  %v1867_v11 = vld [vmem:[#allocation7 + $0x1d0] sm:$0xf0]  ;;  %v1651_v12 = vld [vmem:[#allocation7 + $0x288] sm:$0xf]  ;;  %v1448_v14 = vor.u32 %v1840_v5, %v1447_v4  ;;  %v1339_v15 = vld [vmem:[#allocation7 + $0x18] sm:$0xf] }
  0x28   :  { %903 = vmatpush.bf16.msrb.mxu2 %v1580_v58  ;;  %v1891_v13 = vld [vmem:[#allocation7 + $0x290] sm:$0xf0]  ;;  %v1813_v16 = vld [vmem:[#allocation7 + $0x20] sm:$0xf0]  ;;  %v1435_v17 = vld [vmem:[#allocation7 + $0xd8] sm:$0xf]  ;;  %v1556_v20 = vor.u32 %v1867_v11, %v1555_v9 }
  0x29   :  { %878 = vmatpush.bf16.msra.mxu0 %v1376_v47  ;;  %916 = vmatpush.bf16.msra.mxu3 %v1676_v59  ;;  %v1837_v18 = vld [vmem:[#allocation7 + $0xe0] sm:$0xf0]  ;;  %v1327_v19 = vld [vmem:[#allocation7] sm:$0xf]  ;;  %v1652_v21 = vor.u32 %v1891_v13, %v1651_v12  ;;  %v1543_v22 = vld [vmem:[#allocation7 + $0x1b0] sm:$0xf]  ;;  %v1340_v23 = vor.u32 %v1813_v16, %v1339_v15 }
  0x2a   :  { %v1639_v24 = vld [vmem:[#allocation7 + $0x270] sm:$0xf]  ;;  %v1888_v25 = vld [vmem:[#allocation7 + $0x278] sm:$0xf0]  ;;  %v1436_v26 = vor.u32 %v1837_v18, %v1435_v17  ;;  %v1810_v27 = vld [vmem:[#allocation7 + $0x8] sm:$0xf0] }
  0x2b   :  { %891 = vmatpush.bf16.msrb.mxu1 %v1472_v51  ;;  %v1423_v28 = vld [vmem:[#allocation7 + $0xc0] sm:$0xf]  ;;  %v1834_v29 = vld [vmem:[#allocation7 + $0xc8] sm:$0xf0]  ;;  %v1413_v31 = vld [vmem:[#allocation7 + $0xb4] sm:$0xf0]  ;;  %v1640_v35 = vor.u32 %v1888_v25, %v1639_v24  ;;  %v1328_v37 = vor.u32 %v1810_v27, %v1327_v19 }
  0x2c   :  { %1324 = vmatmul.msk.bf16.vlgmr.msrb.gmra.mxu3 %vm137_vm0, %v2135_v7  ;;  %904 = vmatpush.bf16.msrb.mxu2 %v1568_v6  ;;  %v1864_v7 = vld [vmem:[#allocation7 + $0x1b8] sm:$0xf0]  ;;  %v1830_v30 = vld [vmem:[#allocation7 + $0xac] sm:$0xf]  ;;  %v1509_v33 = vld [vmem:[#allocation7 + $0x174] sm:$0xf0]  ;;  %v1424_v41 = vor.u32 %v1834_v29, %v1423_v28 }
  0x2d   :  { %879 = vmatpush.bf16.msra.mxu0 %v1364_v61  ;;  %917 = vmatpush.bf16.msra.mxu3 %v1664_v8  ;;  %v1854_v32 = vld [vmem:[#allocation7 + $0x16c] sm:$0xf]  ;;  %v1544_v34 = vor.u32 %v1864_v7, %v1543_v22  ;;  %v1531_v36 = vld [vmem:[#allocation7 + $0x198] sm:$0xf]  ;;  %v1861_v38 = vld [vmem:[#allocation7 + $0x1a0] sm:$0xf0]  ;;  %v1416_v42 = vor.u32 %v1830_v30, %v1413_v31 }
  0x2e   :  { %v1627_v39 = vld [vmem:[#allocation7 + $0x258] sm:$0xf]  ;;  %v1885_v40 = vld [vmem:[#allocation7 + $0x260] sm:$0xf0]  ;;  %v1512_v43 = vor.u32 %v1854_v32, %v1509_v33  ;;  %v1827_v44 = vld [vmem:[#allocation7 + $0x94] sm:$0xf]  ;;  %v1532_v48 = vor.u32 %v1861_v38, %v1531_v36 }
  0x2f   :  { %892 = vmatpush.bf16.msrb.mxu1 %v1460_v1  ;;  %v1401_v45 = vld [vmem:[#allocation7 + $0x9c] sm:$0xf0]  ;;  %v1851_v46 = vld [vmem:[#allocation7 + $0x154] sm:$0xf]  ;;  %v1628_v49 = vor.u32 %v1885_v40, %v1627_v39  ;;  %v1824_v52 = vld [vmem:[#allocation7 + $0x7c] sm:$0xf] }
  0x30   :  { %905 = vmatpush.bf16.msrb.mxu2 %v1556_v20  ;;  %v1497_v47 = vld [vmem:[#allocation7 + $0x15c] sm:$0xf0]  ;;  %v1404_v50 = vor.u32 %v1827_v44, %v1401_v45  ;;  %v1389_v53 = vld [vmem:[#allocation7 + $0x84] sm:$0xf0]  ;;  %v1848_v54 = vld [vmem:[#allocation7 + $0x13c] sm:$0xf] }
  0x31   :  { %880 = vmatpush.bf16.msra.mxu0 %v1352_v10  ;;  %918 = vmatpush.bf16.msra.mxu3 %v1652_v21  ;;  %v1500_v51 = vor.u32 %v1851_v46, %v1497_v47  ;;  %v1485_v55 = vld [vmem:[#allocation7 + $0x144] sm:$0xf0]  ;;  %v1392_v56 = vor.u32 %v1824_v52, %v1389_v53  ;;  %v1821_v58 = vld [vmem:[#allocation7 + $0x64] sm:$0xf]  ;;  %v1377_v59 = vld [vmem:[#allocation7 + $0x6c] sm:$0xf0] }
  0x32   :  { %v1488_v57 = vor.u32 %v1848_v54, %v1485_v55  ;;  %v1845_v60 = vld [vmem:[#allocation7 + $0x124] sm:$0xf]  ;;  %v1380_v61 = vor.u32 %v1821_v58, %v1377_v59  ;;  %v1473_v62 = vld [vmem:[#allocation7 + $0x12c] sm:$0xf0]  ;;  %v1519_v0 = vld [vmem:[#allocation7 + $0x180] sm:$0xf] }
  0x33   :  { %893 = vmatpush.bf16.msrb.mxu1 %v1448_v14  ;;  %v1476_v63 = vor.u32 %v1845_v60, %v1473_v62  ;;  %v1858_v1 = vld [vmem:[#allocation7 + $0x188] sm:$0xf0]  ;;  %v1615_v2 = vld [vmem:[#allocation7 + $0x240] sm:$0xf]  ;;  %v1365_v6 = vld [vmem:[#allocation7 + $0x54] sm:$0xf0] }
  0x34   :  { %906 = vmatpush.bf16.msrb.mxu2 %v1544_v34  ;;  %v1520_v3 = vor.u32 %v1858_v1, %v1519_v0  ;;  %v1882_v4 = vld [vmem:[#allocation7 + $0x248] sm:$0xf0]  ;;  %v1461_v11 = vld [vmem:[#allocation7 + $0x114] sm:$0xf0]  ;;  %v1815_v19 = vld [vmem:[#allocation7 + $0x34] sm:$0xf] }
  0x35   :  { %881 = vmatpush.bf16.msra.mxu0 %v1340_v23  ;;  %919 = vmatpush.bf16.msra.mxu3 %v1640_v35  ;;  %v1818_v5 = vld [vmem:[#allocation7 + $0x4c] sm:$0xf]  ;;  %v1616_v8 = vor.u32 %v1882_v4, %v1615_v2  ;;  %v1605_v14 = vld [vmem:[#allocation7 + $0x234] sm:$0xf0]  ;;  %v1353_v20 = vld [vmem:[#allocation7 + $0x3c] sm:$0xf0] }
  0x36   :  { %v1368_v9 = vor.u32 %v1818_v5, %v1365_v6  ;;  %v1842_v10 = vld [vmem:[#allocation7 + $0x10c] sm:$0xf]  ;;  %v1701_v16 = vld [vmem:[#allocation7 + $0x2f4] sm:$0xf0]  ;;  %v1839_v21 = vld [vmem:[#allocation7 + $0xf4] sm:$0xf]  ;;  %v1356_v22 = vor.u32 %v1815_v19, %v1353_v20 }
  0x37   :  { %894 = vmatpush.bf16.msrb.mxu1 %v1436_v26  ;;  %v1878_v12 = vld [vmem:[#allocation7 + $0x22c] sm:$0xf]  ;;  %v1464_v13 = vor.u32 %v1842_v10, %v1461_v11  ;;  %v1449_v23 = vld [vmem:[#allocation7 + $0xfc] sm:$0xf0]  ;;  %v1875_v7 = vld [vmem:[#allocation7 + $0x214] sm:$0xf] }
  0x38   :  { %907 = vmatpush.bf16.msrb.mxu2 %v1532_v48  ;;  %v1902_v15 = vld [vmem:[#allocation7 + $0x2ec] sm:$0xf]  ;;  %v1608_v17 = vor.u32 %v1878_v12, %v1605_v14  ;;  %v1593_v24 = vld [vmem:[#allocation7 + $0x21c] sm:$0xf0]  ;;  %v1452_v25 = vor.u32 %v1839_v21, %v1449_v23  ;;  %v1899_v27 = vld [vmem:[#allocation7 + $0x2d4] sm:$0xf] }
  0x39   :  { %882 = vmatpush.bf16.msra.mxu0 %v1328_v37  ;;  %920 = vmatpush.bf16.msra.mxu3 %v1628_v49  ;;  %v1704_v18 = vor.u32 %v1902_v15, %v1701_v16  ;;  %v1596_v26 = vor.u32 %v1875_v7, %v1593_v24  ;;  %v1689_v28 = vld [vmem:[#allocation7 + $0x2dc] sm:$0xf0]  ;;  %v1812_v30 = vld [vmem:[#allocation7 + $0x1c] sm:$0xf]  ;;  %v1341_v31 = vld [vmem:[#allocation7 + $0x24] sm:$0xf0] }
  0x3a   :  { %v1692_v29 = vor.u32 %v1899_v27, %v1689_v28  ;;  %v1344_v32 = vor.u32 %v1812_v30, %v1341_v31  ;;  %v1836_v33 = vld [vmem:[#allocation7 + $0xdc] sm:$0xf]  ;;  %v1437_v34 = vld [vmem:[#allocation7 + $0xe4] sm:$0xf0]  ;;  %v1833_v44 = vld [vmem:[#allocation7 + $0xc4] sm:$0xf] }
  0x3b   :  { %895 = vmatpush.bf16.msrb.mxu1 %v1424_v41  ;;  %v1872_v35 = vld [vmem:[#allocation7 + $0x1fc] sm:$0xf]  ;;  %v1440_v36 = vor.u32 %v1836_v33, %v1437_v34  ;;  %v1581_v37 = vld [vmem:[#allocation7 + $0x204] sm:$0xf0]  ;;  %v1425_v46 = vld [vmem:[#allocation7 + $0xcc] sm:$0xf0] }
  0x3c   :  { %908 = vmatpush.bf16.msrb.mxu2 %v1520_v3  ;;  %v1896_v38 = vld [vmem:[#allocation7 + $0x2bc] sm:$0xf]  ;;  %v1677_v39 = vld [vmem:[#allocation7 + $0x2c4] sm:$0xf0]  ;;  %v1584_v40 = vor.u32 %v1872_v35, %v1581_v37  ;;  %v1869_v47 = vld [vmem:[#allocation7 + $0x1e4] sm:$0xf]  ;;  %v1428_v49 = vor.u32 %v1833_v44, %v1425_v46 }
  0x3d   :  { %927 = vmatpush.bf16.msrb.mxu0 %v1416_v42  ;;  %921 = vmatpush.bf16.msra.mxu3 %v1616_v8  ;;  %v1680_v41 = vor.u32 %v1896_v38, %v1677_v39  ;;  %v1809_v42 = vld [vmem:[#allocation7 + $0x4] sm:$0xf]  ;;  %v1569_v48 = vld [vmem:[#allocation7 + $0x1ec] sm:$0xf0]  ;;  %v1866_v54 = vld [vmem:[#allocation7 + $0x1cc] sm:$0xf] }
  0x3e   :  { %v1665_v52 = vld [vmem:[#allocation7 + $0x2ac] sm:$0xf0]  ;;  %v1557_v55 = vld [vmem:[#allocation7 + $0x1d4] sm:$0xf0]  ;;  %v1863_v60 = vld [vmem:[#allocation7 + $0x1b4] sm:$0xf] }
  0x3f   :  { %940 = vmatpush.bf16.msra.mxu1 %v1512_v43  ;;  %v1329_v43 = vld [vmem:[#allocation7 + $0xc] sm:$0xf0]  ;;  %v1653_v58 = vld [vmem:[#allocation7 + $0x294] sm:$0xf0]  ;;  %v1887_v62 = vld [vmem:[#allocation7 + $0x274] sm:$0xf] }
  0x40   :  { %953 = vmatpush.bf16.msra.mxu2 %v1608_v17  ;;  %v1332_v45 = vor.u32 %v1809_v42, %v1329_v43  ;;  %v1641_v0 = vld [vmem:[#allocation7 + $0x27c] sm:$0xf0]  ;;  %v107_v2 = vld [vmem:[#allocation6] sm:$0xf]  ;;  %v1533_v4 = vld [vmem:[#allocation7 + $0x1a4] sm:$0xf0] }
  0x41   :  { %928 = vmatpush.bf16.msrb.mxu0 %v1404_v50  ;;  %966 = vmatpush.bf16.msrb.mxu3 %v1704_v18  ;;  %v1572_v50 = vor.u32 %v1869_v47, %v1569_v48  ;;  %v1644_v1 = vor.u32 %v1887_v62, %v1641_v0  ;;  %v1860_v3 = vld [vmem:[#allocation7 + $0x19c] sm:$0xf]  ;;  %v1629_v8 = vld [vmem:[#allocation7 + $0x264] sm:$0xf0]  ;;  %v109_v12 = vperm.slane %v107_v2, 0  ;;  %v111_v35 = vperm.slane %v107_v2, 2 }
  0x42   :  { %v1884_v5 = vld [vmem:[#allocation7 + $0x25c] sm:$0xf]  ;;  %v1536_v6 = vor.u32 %v1860_v3, %v1533_v4  ;;  %v1521_v14 = vld [vmem:[#allocation7 + $0x18c] sm:$0xf0]  ;;  %v1881_v15 = vld [vmem:[#allocation7 + $0x244] sm:$0xf] }
  0x43   :  { %941 = vmatpush.bf16.msra.mxu1 %v1500_v51  ;;  %v1893_v51 = vld [vmem:[#allocation7 + $0x2a4] sm:$0xf]  ;;  %v1632_v10 = vor.u32 %v1884_v5, %v1629_v8  ;;  %v1617_v18 = vld [vmem:[#allocation7 + $0x24c] sm:$0xf0]  ;;  %v1832_v31 = vld [vmem:[#allocation7 + $0xb8] sm:$0xf0] }
  0x44   :  { %954 = vmatpush.bf16.msra.mxu2 %v1596_v26  ;;  %v1668_v53 = vor.u32 %v1893_v51, %v1665_v52  ;;  %v1620_v20 = vor.u32 %v1881_v15, %v1617_v18  ;;  %v1419_v30 = vld [vmem:[#allocation7 + $0xb0] sm:$0xf]  ;;  %v1856_v34 = vld [vmem:[#allocation7 + $0x178] sm:$0xf0]  ;;  %v112_v39 = vperm.slane %v107_v2, 3  ;;  %vm1296_vm12 = vcmask 31744  }
  0x45   :  { %929 = vmatpush.bf16.msrb.mxu0 %v1392_v56  ;;  %967 = vmatpush.bf16.msrb.mxu3 %v1692_v29  ;;  %v1890_v56 = vld [vmem:[#allocation7 + $0x28c] sm:$0xf]  ;;  %v1515_v33 = vld [vmem:[#allocation7 + $0x170] sm:$0xf]  ;;  %v1407_v42 = vld [vmem:[#allocation7 + $0x98] sm:$0xf] }
  0x46   :  { %v1656_v59 = vor.u32 %v1890_v56, %v1653_v58  ;;  %v1503_v46 = vld [vmem:[#allocation7 + $0x158] sm:$0xf]  ;;  %v1853_v47 = vld [vmem:[#allocation7 + $0x160] sm:$0xf0]  ;;  %v1850_v56 = vld [vmem:[#allocation7 + $0x148] sm:$0xf0] }
  0x47   :  { %942 = vmatpush.bf16.msra.mxu1 %v1488_v57  ;;  %v1560_v57 = vor.u32 %v1866_v54, %v1557_v55  ;;  %v1504_v52 = vor.u32 %v1853_v47, %v1503_v46  ;;  %v1826_v54 = vld [vmem:[#allocation7 + $0x88] sm:$0xf0]  ;;  %v1491_v55 = vld [vmem:[#allocation7 + $0x140] sm:$0xf]  ;;  %v1383_v62 = vld [vmem:[#allocation7 + $0x68] sm:$0xf] }
  0x48   :  { %955 = vmatpush.bf16.msra.mxu2 %v1584_v40  ;;  %v1420_v40 = vor.u32 %v1832_v31, %v1419_v30  ;;  %v1479_v0 = vld [vmem:[#allocation7 + $0x128] sm:$0xf]  ;;  %v1707_v18 = vld [vmem:[#allocation7 + $0x2f0] sm:$0xf]  ;;  %v1877_v30 = vld [vmem:[#allocation7 + $0x220] sm:$0xf0] }
  0x49   :  { %930 = vmatpush.bf16.msrb.mxu0 %v1380_v61  ;;  %968 = vmatpush.bf16.msrb.mxu3 %v1680_v41  ;;  %v1545_v61 = vld [vmem:[#allocation7 + $0x1bc] sm:$0xf0]  ;;  %v1516_v41 = vor.u32 %v1856_v34, %v1515_v33  ;;  %v1695_v31 = vld [vmem:[#allocation7 + $0x2d8] sm:$0xf]  ;;  %v1898_v46 = vld [vmem:[#allocation7 + $0x2c8] sm:$0xf0] }
  0x4b   :  { %943 = vmatpush.bf16.msra.mxu1 %v1476_v63  ;;  %v1548_v63 = vor.u32 %v1863_v60, %v1545_v61  ;;  %v1492_v61 = vor.u32 %v1850_v56, %v1491_v55  ;;  %v1575_v55 = vld [vmem:[#allocation7 + $0x1e8] sm:$0xf]  ;;  %v1871_v56 = vld [vmem:[#allocation7 + $0x1f0] sm:$0xf0] }
  0x4c   :  { %956 = vmatpush.bf16.msra.mxu2 %v1572_v50 }
  0x4d   :  { %931 = vmatpush.bf16.msrb.mxu0 %v1368_v9  ;;  %969 = vmatpush.bf16.msrb.mxu3 %v1668_v53  ;;  %v110_v9 = vperm.slane %v107_v2, 1  ;;  %v1395_v53 = vld [vmem:[#allocation7 + $0x80] sm:$0xf] }
  0x4e   :  { %v1396_v60 = vor.u32 %v1826_v54, %v1395_v53  ;;  %v1431_v53 = vld [vmem:[#allocation7 + $0xc8] sm:$0xf]  ;;  %v1835_v54 = vld [vmem:[#allocation7 + $0xd0] sm:$0xf0] }
  0x4f   :  { %944 = vmatpush.bf16.msra.mxu1 %v1464_v13  ;;  %v1857_v13 = vld [vmem:[#allocation7 + $0x184] sm:$0xf] }
  0x50   :  { %957 = vmatpush.bf16.msra.mxu2 %v1560_v57  ;;  %v1524_v17 = vor.u32 %v1857_v13, %v1521_v14  ;;  %v1844_v13 = vld [vmem:[#allocation7 + $0x118] sm:$0xf0]  ;;  %v1611_v14 = vld [vmem:[#allocation7 + $0x230] sm:$0xf] }
  0x51   :  { %932 = vmatpush.bf16.msrb.mxu0 %v1356_v22  ;;  %970 = vmatpush.bf16.msrb.mxu3 %v1656_v59 }
  0x53   :  { %945 = vmatpush.bf16.msra.mxu1 %v1452_v25 }
  0x54   :  { %958 = vmatpush.bf16.msra.mxu2 %v1548_v63  ;;  %v1823_v63 = vld [vmem:[#allocation7 + $0x70] sm:$0xf0] }
  0x55   :  { %933 = vmatpush.bf16.msrb.mxu0 %v1344_v32  ;;  %971 = vmatpush.bf16.msrb.mxu3 %v1644_v1  ;;  %v1847_v1 = vld [vmem:[#allocation7 + $0x130] sm:$0xf0]  ;;  %v1384_v5 = vor.u32 %v1823_v63, %v1383_v62  ;;  %v1563_v63 = vld [vmem:[#allocation7 + $0x1d0] sm:$0xf] }
  0x57   :  { %946 = vmatpush.bf16.msra.mxu1 %v1440_v36 }
  0x58   :  { %959 = vmatpush.bf16.msra.mxu2 %v1536_v6  ;;  %v1480_v6 = vor.u32 %v1847_v1, %v1479_v0  ;;  %v1868_v0 = vld [vmem:[#allocation7 + $0x1d8] sm:$0xf0]  ;;  %v1659_v1 = vld [vmem:[#allocation7 + $0x290] sm:$0xf] }
  0x59   :  { %934 = vmatpush.bf16.msrb.mxu0 %v1332_v45  ;;  %972 = vmatpush.bf16.msrb.mxu3 %v1632_v10  ;;  %v1829_v45 = vld [vmem:[#allocation7 + $0xa0] sm:$0xf0]  ;;  %v1820_v10 = vld [vmem:[#allocation7 + $0x58] sm:$0xf0] }
  0x5a   :  { %v1408_v51 = vor.u32 %v1829_v45, %v1407_v42  ;;  %v1874_v42 = vld [vmem:[#allocation7 + $0x208] sm:$0xf0]  ;;  %v1683_v45 = vld [vmem:[#allocation7 + $0x2c0] sm:$0xf] }
  0x5b   :  { %947 = vmatpush.bf16.msra.mxu1 %v1428_v49 }
  0x5c   :  { %960 = vmatpush.bf16.msra.mxu2 %v1524_v17  ;;  %v1880_v17 = vld [vmem:[#allocation7 + $0x238] sm:$0xf0] }
  0x5d   :  { %973 = vmatpush.bf16.msrb.mxu3 %v1620_v20 }
  0x9b   :  { %v163_v11 = vpop.f32.mrf.mxu1 }
  0x9c   :  { %v164_v16 = vadd.f32 %v163_v11, %v110_v9  ;;  %v1371_v9 = vld [vmem:[#allocation7 + $0x50] sm:$0xf] }
  0x9f   :  { %v150_v19 = vpop.f32.mrf.mxu3 }
  0xa0   :  { %v151_v21 = vadd.f32 %v150_v19, %v109_v12  ;;  %v1467_v12 = vld [vmem:[#allocation7 + $0x110] sm:$0xf]  ;;  %v1904_v19 = vld [vmem:[#allocation7 + $0x2f8] sm:$0xf0] }
  0xa2   :  { %v176_v22 = vpop.f32.mrf.mxu2  ;;  %v193_v23 = vpack.c.bf16 %v164_v16, %v151_v21 }
  0xa3   :  { %v165_v7 = vpop.f32.mrf.mxu1  ;;  %v177_v48 = vadd.f32 %v176_v22, %v111_v35  ;;  %v1372_v22 = vor.u32 %v1820_v10, %v1371_v9  ;;  %v1347_v35 = vld [vmem:[#allocation7 + $0x20] sm:$0xf]  ;;  %v1889_v9 = vld [vmem:[#allocation7 + $0x280] sm:$0xf0] }
  0xa4   :  { %v195_v24 = vunpack.c.l.bf16 %v193_v23  ;;  %v196_v25 = vunpack.c.h.bf16 %v193_v23  ;;  %v1359_v7 = vld [vmem:[#allocation7 + $0x38] sm:$0xf] }
  0xa6   :  { %v203_v26 = vmul.f32 0.010009766, %v195_v24  ;;  %v204_v27 = vmul.f32 0.010009766, %v196_v25  ;;  %vm199_vm1 = vcmp.gt.f32.partialorder %v195_v24, 0.0  ;;  %vm200_vm2 = vcmp.gt.f32.partialorder %v196_v25, 0.0  ;;  %v1817_v24 = vld [vmem:[#allocation7 + $0x40] sm:$0xf0] }
  0xa7   :  { %v152_v28 = vpop.f32.mrf.mxu3  ;;  %vm209_vm3 = vmpackc.low %vm200_vm2, %vm199_vm1  ;;  %v1612_v25 = vor.u32 %v1880_v17, %v1611_v14  ;;  %v1360_v33 = vor.u32 %v1817_v24, %v1359_v7  ;;  %v1635_v14 = vld [vmem:[#allocation7 + $0x260] sm:$0xf]  ;;  %v1912_v7 = vld [vmem:[#allocation9 + $0x38] sm:$0xff] }
  0xa8   :  { %v207_v29 = vpack.c.bf16 %v204_v27, %v203_v26  ;;  %v1708_v26 = vor.u32 %v1904_v19, %v1707_v18  ;;  %v1455_v27 = vld [vmem:[#allocation7 + $0xf8] sm:$0xf]  ;;  %v1841_v28 = vld [vmem:[#allocation7 + $0x100] sm:$0xf0]  ;;  %v1527_v18 = vld [vmem:[#allocation7 + $0x188] sm:$0xf] }
  0xa9   :  { %v1456_v34 = vor.u32 %v1841_v28, %v1455_v27  ;;  %v1859_v19 = vld [vmem:[#allocation7 + $0x190] sm:$0xf0]  ;;  %v1920_v24 = vld [vmem:[#allocation9 + $0x78] sm:$0xff] }
  0xaa   :  { %v178_v32 = vpop.f32.mrf.mxu2  ;;  %v211_v36 = vsel %vm209_vm3, %v193_v23, %v207_v29  ;;  %v1468_v23 = vor.u32 %v1844_v13, %v1467_v12  ;;  %v1599_v29 = vld [vmem:[#allocation7 + $0x218] sm:$0xf]  ;;  %v1539_v12 = vld [vmem:[#allocation7 + $0x1a0] sm:$0xf]  ;;  %v1862_v13 = vld [vmem:[#allocation7 + $0x1a8] sm:$0xf0] }
  0xab   :  { %v351_v37 = vunpack.c.l.b16 %v211_v36  ;;  %v352_v38 = vunpack.c.h.b16 %v211_v36  ;;  %v1901_v32 = vld [vmem:[#allocation7 + $0x2e0] sm:$0xf0]  ;;  %v1814_v36 = vld [vmem:[#allocation7 + $0x28] sm:$0xf0] }
  0xac   :  { %v1348_v47 = vor.u32 %v1814_v36, %v1347_v35  ;;  %v1928_v35 = vld [vmem:[#allocation9 + $0xb8] sm:$0xff]  ;;  %v1907_v36 = vld [vmem:[#allocation9 + $0x10] sm:$0xff] }
  0xad   :  { %v2145_v43 = vpack.c.b16 %v351_v37, %v351_v37  ;;  %v2147_v44 = vpack.c.b16 %v352_v38, %v352_v38  ;;  %v1600_v37 = vor.u32 %v1877_v30, %v1599_v29  ;;  %v1696_v38 = vor.u32 %v1901_v32, %v1695_v31  ;;  %v1910_v29 = vld [vmem:[#allocation9 + $0x28] sm:$0xff]  ;;  %v1909_v31 = vld [vmem:[#allocation9 + $0x20] sm:$0xff] }
  0xae   :  { %v1918_v30 = vld [vmem:[#allocation9 + $0x68] sm:$0xff]  ;;  %v1917_v32 = vld [vmem:[#allocation9 + $0x60] sm:$0xff] }
  0xaf   :  { %v189_v49 = vpop.f32.mrf.mxu3  ;;  %883 = vmatmul.bf16.vlgmr.msra.gmra.mxu0 %v2145_v43  ;;  %896 = vmatmul.bf16.vlgmr.msrb.gmra.mxu1 %v2147_v44 }
  0xb0   :  { %v190_v50 = vadd.f32 %v189_v49, %v112_v39  ;;  %979 = vmatpush.bf16.msra.mxu0 %v1420_v40  ;;  %992 = vmatpush.bf16.msrb.mxu1 %v1516_v41  ;;  %v1443_v39 = vld [vmem:[#allocation7 + $0xe0] sm:$0xf]  ;;  %v1838_v40 = vld [vmem:[#allocation7 + $0xe8] sm:$0xf0]  ;;  %v1335_v49 = vld [vmem:[#allocation7 + $0x8] sm:$0xf] }
  0xb1   :  { %v1587_v41 = vld [vmem:[#allocation7 + $0x200] sm:$0xf] }
  0xb2   :  { %v194_v57 = vpack.c.bf16 %v190_v50, %v177_v48  ;;  %v1444_v48 = vor.u32 %v1838_v40, %v1443_v39  ;;  %v1811_v50 = vld [vmem:[#allocation7 + $0x10] sm:$0xf0] }
  0xb4   :  { %v197_v58 = vunpack.c.l.bf16 %v194_v57  ;;  %v198_v59 = vunpack.c.h.bf16 %v194_v57  ;;  %980 = vmatpush.bf16.msra.mxu0 %v1408_v51  ;;  %993 = vmatpush.bf16.msrb.mxu1 %v1504_v52  ;;  %v1588_v51 = vor.u32 %v1874_v42, %v1587_v41  ;;  %v1684_v52 = vor.u32 %v1898_v46, %v1683_v45  ;;  %v1906_v41 = vld [vmem:[#allocation9 + $0x8] sm:$0xff]  ;;  %v1905_v46 = vld [vmem:[#allocation9] sm:$0xff] }
  0xb5   :  { %v1914_v42 = vld [vmem:[#allocation9 + $0x48] sm:$0xff] }
  0xb6   :  { %v205_v2 = vmul.f32 0.010009766, %v197_v58  ;;  %v206_v3 = vmul.f32 0.010009766, %v198_v59  ;;  %vm201_vm4 = vcmp.gt.f32.partialorder %v197_v58, 0.0  ;;  %vm202_vm5 = vcmp.gt.f32.partialorder %v198_v59, 0.0  ;;  %v1895_v58 = vld [vmem:[#allocation7 + $0x2b0] sm:$0xf0] }
  0xb7   :  { %v191_v4 = vpop.f32.mrf.mxu3  ;;  %vm210_vm6 = vmpackc.low %vm202_vm5, %vm201_vm4  ;;  %v1336_v59 = vor.u32 %v1811_v50, %v1335_v49  ;;  %v1926_v45 = vld [vmem:[#allocation9 + $0xa8] sm:$0xff] }
  0xb8   :  { %981 = vmatpush.bf16.msra.mxu0 %v1396_v60  ;;  %994 = vmatpush.bf16.msrb.mxu1 %v1492_v61  ;;  %v208_v8 = vpack.c.bf16 %v206_v3, %v205_v2  ;;  %v1432_v60 = vor.u32 %v1835_v54, %v1431_v53  ;;  %v1576_v61 = vor.u32 %v1871_v56, %v1575_v55  ;;  %v1892_v2 = vld [vmem:[#allocation7 + $0x298] sm:$0xf0] }
  0xb9   :  { %v1564_v3 = vor.u32 %v1868_v0, %v1563_v63  ;;  %v1660_v4 = vor.u32 %v1892_v2, %v1659_v1  ;;  %v1924_v54 = vld [vmem:[#allocation9 + $0x98] sm:$0xff]  ;;  %v1922_v0 = vld [vmem:[#allocation9 + $0x88] sm:$0xff] }
  0xba   :  { %v212_v11 = vsel %vm210_vm6, %v194_v57, %v208_v8  ;;  %v1671_v57 = vld [vmem:[#allocation7 + $0x2a8] sm:$0xf]  ;;  %v1647_v8 = vld [vmem:[#allocation7 + $0x278] sm:$0xf] }
  0xbb   :  { %v353_v15 = vunpack.c.l.b16 %v212_v11  ;;  %v354_v16 = vunpack.c.h.b16 %v212_v11  ;;  %v1672_v62 = vor.u32 %v1895_v58, %v1671_v57  ;;  %v1648_v11 = vor.u32 %v1889_v9, %v1647_v8  ;;  %v1923_v57 = vld [vmem:[#allocation9 + $0x90] sm:$0xff] }
  0xbc   :  { %982 = vmatpush.bf16.msra.mxu0 %v1384_v5  ;;  %995 = vmatpush.bf16.msrb.mxu1 %v1480_v6  ;;  %v1551_v5 = vld [vmem:[#allocation7 + $0x1b8] sm:$0xf]  ;;  %v1865_v6 = vld [vmem:[#allocation7 + $0x1c0] sm:$0xf0] }
  0xbd   :  { %v2151_v20 = vpack.c.b16 %v353_v15, %v353_v15  ;;  %v2153_v21 = vpack.c.b16 %v354_v16, %v354_v16  ;;  %v1552_v10 = vor.u32 %v1865_v6, %v1551_v5  ;;  %v1886_v15 = vld [vmem:[#allocation7 + $0x268] sm:$0xf0]  ;;  %v1540_v16 = vor.u32 %v1862_v13, %v1539_v12 }
  0xbe   :  { %v1636_v17 = vor.u32 %v1886_v15, %v1635_v14 }
  0xbf   :  { %909 = vmatmul.bf16.vlgmr.msrb.gmra.mxu2 %v2151_v20  ;;  %922 = vmatmul.bf16.vlgmr.msra.gmra.mxu3 %v2153_v21 }
  0xc0   :  { %935 = vmatmul.bf16.vlgmr.msrb.gmra.mxu0 %v2145_v43  ;;  %948 = vmatmul.bf16.vlgmr.msra.gmra.mxu1 %v2147_v44 }
  0xc1   :  { %983 = vmatpush.bf16.msra.mxu0 %v1372_v22  ;;  %996 = vmatpush.bf16.msrb.mxu1 %v1468_v23  ;;  %v1623_v22 = vld [vmem:[#allocation7 + $0x248] sm:$0xf]  ;;  %v1883_v23 = vld [vmem:[#allocation7 + $0x250] sm:$0xf0] }
  0xc2   :  { %1005 = vmatpush.bf16.msrb.mxu2 %v1612_v25  ;;  %1018 = vmatpush.bf16.msra.mxu3 %v1708_v26  ;;  %v1911_v25 = vld [vmem:[#allocation9 + $0x30] sm:$0xff] }
  0xc3   :  { %v1919_v26 = vld [vmem:[#allocation9 + $0x70] sm:$0xff] }
  0xc5   :  { %984 = vmatpush.bf16.msra.mxu0 %v1360_v33  ;;  %997 = vmatpush.bf16.msrb.mxu1 %v1456_v34  ;;  %v1908_v33 = vld [vmem:[#allocation9 + $0x18] sm:$0xff] }
  0xc6   :  { %1006 = vmatpush.bf16.msrb.mxu2 %v1600_v37  ;;  %1019 = vmatpush.bf16.msra.mxu3 %v1696_v38  ;;  %v1916_v34 = vld [vmem:[#allocation9 + $0x58] sm:$0xff]  ;;  %v1915_v37 = vld [vmem:[#allocation9 + $0x50] sm:$0xff] }
  0xc7   :  { %v1927_v38 = vld [vmem:[#allocation9 + $0xb0] sm:$0xff] }
  0xc9   :  { %985 = vmatpush.bf16.msra.mxu0 %v1348_v47  ;;  %998 = vmatpush.bf16.msrb.mxu1 %v1444_v48  ;;  %v1913_v47 = vld [vmem:[#allocation9 + $0x40] sm:$0xff] }
  0xca   :  { %1007 = vmatpush.bf16.msrb.mxu2 %v1588_v51  ;;  %1020 = vmatpush.bf16.msra.mxu3 %v1684_v52  ;;  %v1925_v48 = vld [vmem:[#allocation9 + $0xa0] sm:$0xff]  ;;  %v341_v51 = vld [vmem:[%s2178_s4] sm:$0x7] }
  0xcb   :  { %v343_v55 = vperm.slane %v341_v51, 0  ;;  %v344_v56 = vperm.slane %v341_v51, 1 }
  0xcd   :  { %986 = vmatpush.bf16.msra.mxu0 %v1336_v59  ;;  %999 = vmatpush.bf16.msrb.mxu1 %v1432_v60 }
  0xce   :  { %1008 = vmatpush.bf16.msrb.mxu2 %v1576_v61  ;;  %1021 = vmatpush.bf16.msra.mxu3 %v1672_v62 }
  0xcf   :  { %961 = vmatmul.bf16.vlgmr.msra.gmra.mxu2 %v2151_v20  ;;  %974 = vmatmul.bf16.vlgmr.msrb.gmra.mxu3 %v2153_v21 }
  0xd0   :  { %987 = vmatmul.bf16.vlgmr.msra.gmra.mxu0 %v2145_v43  ;;  %1000 = vmatmul.bf16.vlgmr.msrb.gmra.mxu1 %v2147_v44  ;;  %v1528_v43 = vor.u32 %v1859_v19, %v1527_v18  ;;  %v1624_v44 = vor.u32 %v1883_v23, %v1623_v22 }
  0xd1   :  { %1255 = vmatpush.bf16.msrb.mxu0 %v1912_v7  ;;  %1268 = vmatpush.bf16.msra.mxu1 %v1920_v24 }
  0xd2   :  { %1009 = vmatpush.bf16.msrb.mxu2 %v1564_v3  ;;  %1022 = vmatpush.bf16.msra.mxu3 %v1660_v4  ;;  %v1921_v4 = vld [vmem:[#allocation9 + $0x80] sm:$0xff] }
  0xd5   :  { %1256 = vmatpush.bf16.msrb.mxu0 %v1911_v25  ;;  %1269 = vmatpush.bf16.msra.mxu1 %v1919_v26 }
  0xd6   :  { %1010 = vmatpush.bf16.msrb.mxu2 %v1552_v10  ;;  %1023 = vmatpush.bf16.msra.mxu3 %v1648_v11 }
  0xd9   :  { %1257 = vmatpush.bf16.msrb.mxu0 %v1910_v29  ;;  %1270 = vmatpush.bf16.msra.mxu1 %v1918_v30 }
  0xda   :  { %1011 = vmatpush.bf16.msrb.mxu2 %v1540_v16  ;;  %1024 = vmatpush.bf16.msra.mxu3 %v1636_v17  ;;  %v345_v16 = vperm.slane %v341_v51, 2 }
  0xdd   :  { %1258 = vmatpush.bf16.msrb.mxu0 %v1909_v31  ;;  %1271 = vmatpush.bf16.msra.mxu1 %v1917_v32 }
  0xde   :  { %1012 = vmatpush.bf16.msrb.mxu2 %v1528_v43  ;;  %1025 = vmatpush.bf16.msra.mxu3 %v1624_v44 }
  0xe1   :  { %1013 = vmatmul.bf16.vlgmr.msrb.gmra.mxu2 %v2151_v20  ;;  %1026 = vmatmul.bf16.vlgmr.msra.gmra.mxu3 %v2153_v21 }
  0xe2   :  { %1259 = vmatpush.bf16.msrb.mxu0 %v1908_v33  ;;  %1272 = vmatpush.bf16.msra.mxu1 %v1916_v34 }
  0xe3   :  { %1281 = vmatpush.bf16.msra.mxu2 %v1928_v35 }
  0xe6   :  { %1260 = vmatpush.bf16.msrb.mxu0 %v1907_v36  ;;  %1273 = vmatpush.bf16.msra.mxu1 %v1915_v37 }
  0xe7   :  { %1282 = vmatpush.bf16.msra.mxu2 %v1927_v38 }
  0xea   :  { %1261 = vmatpush.bf16.msrb.mxu0 %v1906_v41  ;;  %1274 = vmatpush.bf16.msra.mxu1 %v1914_v42 }
  0xeb   :  { %1283 = vmatpush.bf16.msra.mxu2 %v1926_v45  ;;  %v1940_v45 = vld [vmem:[%s2180_s6] ss:$0 sm:$0xff] }
  0xee   :  { %1262 = vmatpush.bf16.msrb.mxu0 %v1905_v46  ;;  %1275 = vmatpush.bf16.msra.mxu1 %v1913_v47 }
  0xef   :  { %1284 = vmatpush.bf16.msra.mxu2 %v1925_v48 }
  0xf3   :  { %1285 = vmatpush.bf16.msra.mxu2 %v1924_v54 }
  0xf7   :  { %1286 = vmatpush.bf16.msra.mxu2 %v1923_v57 }
  0xfb   :  { %1287 = vmatpush.bf16.msra.mxu2 %v1922_v0 }
  0xff   :  { %1288 = vmatpush.bf16.msra.mxu2 %v1921_v4 }
 0x12c   :  { %v884_v27 = vpop.f32.mrf.mxu0  ;;  %v897_v28 = vpop.f32.mrf.mxu1 }
 0x12d   :  { %v885_v60 = vadd.f32 %v884_v27, %v343_v55 }
 0x12f   :  { %v898_v1 = vadd.f32 %v897_v28, %v885_v60 }
 0x134   :  { %v886_v20 = vpop.f32.mrf.mxu0  ;;  %v899_v21 = vpop.f32.mrf.mxu1 }
 0x13d   :  { %v936_v39 = vpop.f32.mrf.mxu0  ;;  %v949_v40 = vpop.f32.mrf.mxu1 }
 0x13e   :  { %v937_v61 = vadd.f32 %v936_v39, %v344_v56 }
 0x140   :  { %v950_v2 = vadd.f32 %v949_v40, %v937_v61 }
 0x142   :  { %v910_v49 = vpop.f32.mrf.mxu2  ;;  %v923_v50 = vpop.f32.mrf.mxu3 }
 0x143   :  { %v911_v3 = vadd.f32 %v910_v49, %v898_v1 }
 0x145   :  { %v938_v52 = vpop.f32.mrf.mxu0  ;;  %v951_v53 = vpop.f32.mrf.mxu1  ;;  %v924_v9 = vadd.f32 %v923_v50, %v911_v3 }
 0x14a   :  { %v912_v58 = vpop.f32.mrf.mxu2  ;;  %v925_v59 = vpop.f32.mrf.mxu3 }
 0x14d   :  { %v988_v62 = vpop.f32.mrf.mxu0  ;;  %v1001_v63 = vpop.f32.mrf.mxu1 }
 0x14e   :  { %v989_v43 = vadd.f32 %v988_v62, %v345_v16 }
 0x150   :  { %v1002_v27 = vadd.f32 %v1001_v63, %v989_v43 }
 0x152   :  { %v962_v5 = vpop.f32.mrf.mxu2  ;;  %v975_v6 = vpop.f32.mrf.mxu3 }
 0x153   :  { %v963_v8 = vadd.f32 %v962_v5, %v950_v2 }
 0x155   :  { %v976_v10 = vadd.f32 %v975_v6, %v963_v8  ;;  %v990_v11 = vpop.f32.mrf.mxu0  ;;  %v1003_v12 = vpop.f32.mrf.mxu1 }
 0x157   :  { %v1031_v13 = vpack.c.bf16 %v976_v10, %v924_v9 }
 0x159   :  { %v1033_v14 = vunpack.c.l.bf16 %v1031_v13  ;;  %v1034_v15 = vunpack.c.h.bf16 %v1031_v13 }
 0x15a   :  { %v964_v17 = vpop.f32.mrf.mxu2  ;;  %v977_v18 = vpop.f32.mrf.mxu3 }
 0x15b   :  { %vm1036_vm7 = vcmp.gt.f32.partialorder %v1033_v14, 0.0  ;;  %vm1037_vm8 = vcmp.gt.f32.partialorder %v1034_v15, 0.0  ;;  %v1039_v19 = vmul.f32 0.010009766, %v1033_v14  ;;  %v1040_v22 = vmul.f32 0.010009766, %v1034_v15 }
 0x15c   :  { %vm1044_vm9 = vmpackc.low %vm1037_vm8, %vm1036_vm7 }
 0x15d   :  { %v1042_v23 = vpack.c.bf16 %v1040_v22, %v1039_v19 }
 0x15f   :  { %v1046_v44 = vsel %vm1044_vm9, %v1031_v13, %v1042_v23 }
 0x160   :  { %v1102_v7 = vunpack.c.l.b16 %v1046_v44  ;;  %v1103_v24 = vunpack.c.h.b16 %v1046_v44 }
 0x162   :  { %v1105_v25 = vpack.c.b16 %v1102_v7, %v1102_v7  ;;  %v1106_v26 = vpack.c.b16 %v1103_v24, %v1103_v24 }
 0x164   :  { %v1014_v28 = vpop.f32.mrf.mxu2  ;;  %v1027_v29 = vpop.f32.mrf.mxu3  ;;  %1263 = vmatmul.bf16.vlgmr.msrb.gmra.mxu0 %v1105_v25  ;;  %1276 = vmatmul.bf16.vlgmr.msra.gmra.mxu1 %v1106_v26 }
 0x165   :  { %v1015_v30 = vadd.f32 %v1014_v28, %v1002_v27 }
 0x167   :  { %v1028_v31 = vadd.f32 %v1027_v29, %v1015_v30 }
 0x169   :  { %v1032_v32 = vpack.c.bf16 %v1028_v31, %v1028_v31 }
 0x16b   :  { %v1035_v20 = vunpack.c.l.bf16 %v1032_v32 }
 0x16c   :  { %v1016_v21 = vpop.f32.mrf.mxu2  ;;  %v1029_v33 = vpop.f32.mrf.mxu3 }
 0x16d   :  { %vm1038_vm10 = vcmp.gt.f32.partialorder %v1035_v20, 0.0  ;;  %v1041_v34 = vmul.f32 0.010009766, %v1035_v20 }
 0x16e   :  { %vm1045_vm11 = vmpackc.low %vm1038_vm10, %vm1038_vm10 }
 0x16f   :  { %v1043_v35 = vpack.c.bf16 %v1041_v34, %v1041_v34 }
 0x171   :  { %v1047_v36 = vsel %vm1045_vm11, %v1032_v32, %v1043_v35 }
 0x172   :  { %v1104_v37 = vunpack.c.l.b16 %v1047_v36 }
 0x174   :  { %v1107_v38 = vpack.c.b16 %v1104_v37, %v1104_v37 }
 0x176   :  { %1289 = vmatmul.bf16.vlgmr.msra.gmra.mxu2 %v1107_v38 }
 0x1e1   :  { %v1264_v39 = vpop.f32.mrf.mxu0  ;;  %v1277_v40 = vpop.f32.mrf.mxu1 }
 0x1e2   :  { %v1265_v46 = vadd.f32 %v1940_v45, %v1264_v39 }
 0x1e4   :  { %v1278_v47 = vadd.f32 %v1277_v40, %v1265_v46 }
 0x1e9   :  { %v1266_v41 = vpop.f32.mrf.mxu0  ;;  %v1279_v42 = vpop.f32.mrf.mxu1 }
 0x1f9   :  { %v1290_v48 = vpop.f32.mrf.mxu2 }
 0x1fa   :  { %v1291_v49 = vadd.f32 %v1290_v48, %v1278_v47 }
 0x1fc   :  { %1941 = vtanh.f32 %v1291_v49 }
 0x201   :  { %v1292_v50 = vpop.f32.mrf.mxu2 }
 0x202   :  { %v1942_v51 = vpop.eup %1941 }
 0x203   :  { %v1295_v52 = vmul.f32 2.0, %v1942_v51 }
 0x205   :  { %1297 = vst.msk [vmem:[%s2181_s7] sm:$0xff] %vm1296_vm12, %v1295_v52 }
 0x206   :  { %1302 = vsyncpa [#allocation3], 1 }
 0x207   :  { %1303 = vsyncpa [#allocation5], 1 }
 0x208   :  { %1304 = vsyncpa [#allocation8], 1 }

</bundles_post_ra>
